<compile_context>
chip_gen: v7x
topology: tpu7x:2x2x1
jax: 0.10.0
libtpu: 0.0.40
codegen_flags: <defaults>
</compile_context>

<pallas_src>
import functools
import math

import jax
import jax.numpy as jnp
from jax.experimental import pallas as pl
from jax.experimental.pallas import tpu as pltpu


def _round_up(a, b):
    return (a + b - 1) // b * b


def _cdiv(a, b):
    return -(-a // b)


def _vmem_capacity_bytes():
    try:
        info = pltpu.get_tpu_info()
        return int(getattr(info, "vmem_capacity_bytes", 64 << 20))
    except Exception:
        return 64 << 20  # conservative fallback (v7x per-core VMEM)


def _working_set_bytes(tb, to, pf, out_itemsize):
    ws = 2 * tb * pf * 2              # x tile, bf16, double-buffered
    ws += 2 * to * pf * 2             # weight tile, bf16, double-buffered
    ws += 2 * tb * to * out_itemsize  # output tile, double-buffered
    ws += 4 * tb * 128 * 4            # (TB,1) sx / target tiles (lane padded)
    ws += 2 * to * pf * 4             # in-kernel f32 temporaries for ||w||^2
    return ws


def _pick_tiles(batch, out_features, pf, budget, out_itemsize):
    tb = min(512, _round_up(batch, 8))
    to = min(1024, _round_up(out_features, 128))
    while _working_set_bytes(tb, to, pf, out_itemsize) > budget and to > 128:
        to -= 128
    while _working_set_bytes(tb, to, pf, out_itemsize) > budget and tb > 8:
        tb = _round_up(tb // 2, 8)
    # Rebalance: keep the tile count, shrink tiles to the balanced size so no
    # tile is mostly zero padding (e.g. batch=300 must not pad to 512).
    n_bt = _cdiv(batch, tb)
    tb = _round_up(_cdiv(batch, n_bt), 8)
    n_ot = _cdiv(out_features, to)
    to = _round_up(_cdiv(out_features, n_ot), 128)
    return tb, to, tb * n_bt, to * n_ot


def _angle_linear_kernel(*refs, margin_s, scale, to_tile, apply_margin):
    if apply_margin:
        x_ref, w_ref, sx_ref, tgt_ref, o_ref = refs
    else:
        x_ref, w_ref, sx_ref, o_ref = refs

    w = w_ref[...]                                      # (TO, F) bf16
    # (TB, F) x (TO, F), contracting F on the MXU with f32 accumulation.
    wx = jax.lax.dot_general(
        x_ref[...], w,
        dimension_numbers=(((1,), (1,)), ((), ())),
        preferred_element_type=jnp.float32)             # (TB, TO) f32

    # Per-row inverse weight norms from the already-resident bf16 tile.
    # 1/max(||w||,1e-4) == rsqrt(max(||w||^2,1e-8)) (torch clamp semantics).
    # The ones-row matmul lands the result directly in (1, TO) lane layout,
    # so no cross-lane reduce / transpose is needed.  Padded (all-zero) rows
    # get inv_nw = 1e4 but wx = 0 there, so they stay inert.
    w32 = w.astype(jnp.float32)
    ones_row = jnp.ones((1, w32.shape[1]), jnp.float32)
    nsq = jax.lax.dot_general(
        ones_row, w32 * w32,
        dimension_numbers=(((1,), (1,)), ((), ())),
        preferred_element_type=jnp.float32)              # (1, TO)
    inv_nw = jax.lax.rsqrt(jnp.maximum(nsq, 1e-8))       # (1, TO)

    # sx carries scale/||x||, so clamp bounds are +/-scale and the margin is
    # pre-multiplied by scale (one less full-tile multiply).
    out = jnp.clip(wx * sx_ref[...] * inv_nw, -scale, scale)

    if apply_margin:
        col = (jax.lax.broadcasted_iota(jnp.int32, out.shape, 1)
               + pl.program_id(0) * to_tile)
        out = jnp.where(col == tgt_ref[...], out - margin_s, out)

    o_ref[...] = out.astype(o_ref.dtype)


def angle_linear(x, weight, target=None, *, margin=0.35, scale=30.0,
                 out_dtype=jnp.float32):
    """Pallas TPU implementation of AngleLinear.forward.

    x:      (batch, in_features) float
    weight: (out_features, in_features) float
    target: optional (batch,) int class indices
    Returns (batch, out_features) logits in `out_dtype` (float32 by default;
    pass jnp.bfloat16 to halve the output write-back if the loss allows it).
    """
    batch, in_features = x.shape
    out_features, in_features_w = weight.shape
    assert in_features == in_features_w

    x = jnp.asarray(x, jnp.float32)

    # Exact f32 inverse x-row norms with `scale` folded in (x is tiny
    # relative to the weight, so this wrapper pass is cheap).
    sx = scale * jax.lax.rsqrt(
        jnp.maximum(jnp.sum(x * x, axis=1, keepdims=True), 1e-8))    # (B, 1)

    pf = _round_up(in_features, 128)
    out_itemsize = jnp.dtype(out_dtype).itemsize

    vmem_cap = _vmem_capacity_bytes()
    vmem_limit = int(min((vmem_cap * 3) // 4, 96 << 20))
    tile_budget = (vmem_limit * 4) // 5
    TB, TO, pb, po = _pick_tiles(batch, out_features, pf, tile_budget,
                                 out_itemsize)

    # bf16 MXU operands. Weight norms are recovered in-kernel, so the f32
    # weight is read exactly once here (for inference-style use, this bf16
    # cast+pad can additionally be hoisted to one-time parameter prep).
    xp = jnp.pad(x.astype(jnp.bfloat16),
                 ((0, pb - batch), (0, pf - in_features)))
    wp = jnp.pad(jnp.asarray(weight, jnp.bfloat16),
                 ((0, po - out_features), (0, pf - in_features)))
    sxp = jnp.pad(sx, ((0, pb - batch), (0, 0)))

    apply_margin = target is not None
    args = [xp, wp, sxp]
    in_specs = [
        pl.BlockSpec((TB, pf), lambda j, i: (i, 0)),   # x (re-streamed)
        pl.BlockSpec((TO, pf), lambda j, i: (j, 0)),   # weight (resident in i)
        pl.BlockSpec((TB, 1), lambda j, i: (i, 0)),    # scale / ||x||
    ]
    if apply_margin:
        tgt = jnp.pad(jnp.asarray(target, jnp.int32).reshape(batch, 1),
                      ((0, pb - batch), (0, 0)), constant_values=-1)
        args.append(tgt)
        in_specs.append(pl.BlockSpec((TB, 1), lambda j, i: (i, 0)))

    kernel = functools.partial(
        _angle_linear_kernel,
        margin_s=float(margin) * float(scale), scale=float(scale),
        to_tile=TO, apply_margin=apply_margin)

    out = pl.pallas_call(
        kernel,
        out_shape=jax.ShapeDtypeStruct((pb, po), out_dtype),
        grid=(po // TO, pb // TB),
        in_specs=in_specs,
        out_specs=pl.BlockSpec((TB, TO), lambda j, i: (i, j)),
        compiler_params=pltpu.CompilerParams(
            dimension_semantics=("parallel", "arbitrary"),
            vmem_limit_bytes=vmem_limit),
    )(*args)

    return out[:batch, :out_features]


def _reference(x, weight, target=None, *, margin=0.35, scale=30.0):
    """Pure-JAX f32 reference mirroring the PyTorch forward."""
    norm_w = jnp.linalg.norm(weight, axis=1, keepdims=True)
    unit_w = weight / jnp.maximum(norm_w, 1e-4)
    norm_x = jnp.linalg.norm(x, axis=1, keepdims=True)
    unit_x = x / jnp.maximum(norm_x, 1e-4)
    wx = jnp.clip(unit_x @ unit_w.T, -1.0, 1.0)
    if target is not None:
        onehot = jax.nn.one_hot(target, weight.shape[0], dtype=bool)
        wx = jnp.where(onehot, wx - margin, wx)
    return wx * scale


if __name__ == "__main__":
    def _run_case(key, batch, in_features, out_features, margin=0.35, scale=30.0):
        kx, kw, kt = jax.random.split(key, 3)
        # reset_parameters(): uniform(-stdv, stdv), stdv = 1/sqrt(in_features).
        stdv = 1.0 / math.sqrt(in_features)
        weight = jax.random.uniform(kw, (out_features, in_features),
                                    minval=-stdv, maxval=stdv, dtype=jnp.float32)
        x = jax.random.normal(kx, (batch, in_features), dtype=jnp.float32)
        target = jax.random.randint(kt, (batch,), 0, out_features, dtype=jnp.int32)

        out_infer = angle_linear(x, weight, None, margin=margin, scale=scale)
        out_train = angle_linear(x, weight, target, margin=margin, scale=scale)
        jax.block_until_ready((out_infer, out_train))

        ref_infer = _reference(x, weight, None, margin=margin, scale=scale)
        ref_train = _reference(x, weight, target, margin=margin, scale=scale)
        assert out_infer.shape == ref_infer.shape
        assert out_train.shape == ref_train.shape
        # bf16 MXU operands + in-kernel bf16 weight norms -> loose tolerance.
        err_i = float(jnp.max(jnp.abs(out_infer - ref_infer)))
        err_t = float(jnp.max(jnp.abs(out_train - ref_train)))
        assert jnp.allclose(out_infer, ref_infer, atol=0.5, rtol=0.05), err_i
        assert jnp.allclose(out_train, ref_train, atol=0.5, rtol=0.05), err_t

    key = jax.random.PRNGKey(0)
    k1, k2 = jax.random.split(key)
    # Module-consistent small shapes (in_features=32, out_features=64, batch=8).
    _run_case(k1, batch=8, in_features=32, out_features=64)
    # Non-aligned shapes: exercises batch/out/feature padding inertness.
    _run_case(k2, batch=20, in_features=72, out_features=300)

    print("KERNEL_OK")
</pallas_src>

<mosaic_0001>
module attributes {stable_mosaic.version = 11 : i64} {
  func.func @_angle_linear_kernel(%arg0: i32, %arg1: i32, %arg2: memref<8x128xbf16, #tpu.memory_space<vmem>>, %arg3: memref<128x128xbf16, #tpu.memory_space<vmem>>, %arg4: memref<8x1xf32, #tpu.memory_space<vmem>>, %arg5: memref<8x128xf32, #tpu.memory_space<vmem>>) attributes {dimension_semantics = [#tpu.dimension_semantics<parallel>, #tpu.dimension_semantics<arbitrary>], iteration_bounds = array<i64: 1, 1>, scalar_prefetch = 0 : i64, scratch_operands = 0 : i64, tpu.core_type = #tpu.core_type<tc>, window_params = [{transform_indices = @transform_0, window_bounds = array<i64: 8, 128>}, {transform_indices = @transform_1, window_bounds = array<i64: 128, 128>}, {transform_indices = @transform_2, window_bounds = array<i64: 8, 1>}, {transform_indices = @transform_3, window_bounds = array<i64: 8, 128>}]} {
    %c0 = arith.constant 0 : index
    %c0_0 = arith.constant 0 : index
    %0 = vector.load %arg3[%c0, %c0_0] : memref<128x128xbf16, #tpu.memory_space<vmem>>, vector<128x128xbf16>
    %c0_1 = arith.constant 0 : index
    %c0_2 = arith.constant 0 : index
    %1 = vector.load %arg2[%c0_1, %c0_2] : memref<8x128xbf16, #tpu.memory_space<vmem>>, vector<8x128xbf16>
    %cst = arith.constant dense<0.000000e+00> : vector<8x128xf32>
    %2 = tpu.matmul %1, %0, %cst {dimension_numbers = #tpu.dot_dimension_numbers<[1], [1], [0], [0], [0, 0, 1, 0], [], []>} : vector<8x128xbf16>, vector<128x128xbf16>, vector<8x128xf32> -> vector<8x128xf32>
    %3 = arith.extf %0 : vector<128x128xbf16> to vector<128x128xf32>
    %cst_3 = arith.constant 1.000000e+00 : f32
    %4 = vector.broadcast %cst_3 : f32 to vector<1x128xf32>
    %5 = arith.mulf %3, %3 : vector<128x128xf32>
    %cst_4 = arith.constant dense<0.000000e+00> : vector<1x128xf32>
    %6 = tpu.matmul %4, %5, %cst_4 {dimension_numbers = #tpu.dot_dimension_numbers<[1], [1], [0], [0], [0, 0, 1, 0], [], []>} : vector<1x128xf32>, vector<128x128xf32>, vector<1x128xf32> -> vector<1x128xf32>
    %cst_5 = arith.constant 9.99999993E-9 : f32
    %7 = vector.broadcast %cst_5 : f32 to vector<1x128xf32>
    %8 = arith.maximumf %6, %7 : vector<1x128xf32>
    %9 = math.rsqrt %8 : vector<1x128xf32>
    %c0_6 = arith.constant 0 : index
    %c0_7 = arith.constant 0 : index
    %10 = vector.load %arg4[%c0_6, %c0_7] : memref<8x1xf32, #tpu.memory_space<vmem>>, vector<8x1xf32>
    %11 = vector.broadcast %10 : vector<8x1xf32> to vector<8x128xf32>
    %12 = arith.mulf %2, %11 : vector<8x128xf32>
    %13 = vector.broadcast %9 : vector<1x128xf32> to vector<8x128xf32>
    %14 = arith.mulf %12, %13 : vector<8x128xf32>
    %cst_8 = arith.constant -3.000000e+01 : f32
    %cst_9 = arith.constant 3.000000e+01 : f32
    %15 = vector.broadcast %cst_8 : f32 to vector<8x128xf32>
    %16 = arith.maximumf %15, %14 : vector<8x128xf32>
    %17 = vector.broadcast %cst_9 : f32 to vector<8x128xf32>
    %18 = arith.minimumf %17, %16 : vector<8x128xf32>
    %c0_10 = arith.constant 0 : index
    %c0_11 = arith.constant 0 : index
    %19 = vector.load %arg5[%c0_10, %c0_11] : memref<8x128xf32, #tpu.memory_space<vmem>>, vector<8x128xf32>
    tpu.vector_store %arg5[%c0_10, %c0_11], %18 {strides = array<i32>} : memref<8x128xf32, #tpu.memory_space<vmem>>, vector<8x128xf32>,
    return
  }
  func.func @transform_0(%arg0: i32, %arg1: i32) -> (i32, i32) {
    %c0_i32 = arith.constant 0 : i32
    %c0_i32_0 = arith.constant 0 : i32
    return %arg1, %c0_i32 : i32, i32
  }
  func.func @transform_1(%arg0: i32, %arg1: i32) -> (i32, i32) {
    %c0_i32 = arith.constant 0 : i32
    %c0_i32_0 = arith.constant 0 : i32
    return %arg0, %c0_i32 : i32, i32
  }
  func.func @transform_2(%arg0: i32, %arg1: i32) -> (i32, i32) {
    %c0_i32 = arith.constant 0 : i32
    %c0_i32_0 = arith.constant 0 : i32
    return %arg1, %c0_i32 : i32, i32
  }
  func.func @transform_3(%arg0: i32, %arg1: i32) -> (i32, i32) {
    %c0_i32 = arith.constant 0 : i32
    return %arg1, %arg0 : i32, i32
  }
}

</mosaic_0001>

<bundles_post_ra>
// kernel: tpu_custom_call.1
= control target key start
LH: loop header
LB: loop body
LE: loop exit
PB: predicated region body
PF: predicated region fallthrough
CT: control target
= control target key end

     0   :  { %8 = vsyncpa [#allocation3], 0  ;;  %s536_s0 = inlined_call_operand.vmem [shape: bf16[8,128], index: 0, kind: input, shape index: {}]   ;;  %s537_s1 = inlined_call_operand.hbm [shape: bf16[128,128], index: 1, kind: input, shape index: {}]   ;;  %s538_s2 = inlined_call_operand.vmem [shape: f32[8,1], index: 2, kind: input, shape index: {}]   ;;  %s539_s3 = inlined_call_operand.hbm [shape: f32[8,128], index: 3, kind: output, shape index: {}]  }
   0x1   :  { %9 = vsyncpa [#allocation4], 0  ;;  %s459_s12 = smov [#allocation2]   ;;  %s411_s16 = scalar_lea.hbm %s537_s1, 1024 }
   0x2   :  { %s17_s13 = sshll.u32 %s459_s12, 4  ;;  %p412_p0 = scmp.ne.s32.totalorder %s537_s1, %s411_s16  ;;  %s18_s13 = int_to_ptr.vmem [resolvable:$true] %s17_s13 }
   0x3   :  { %p415_p1 = scmp.lt.u32.totalorder %s411_s16, %s537_s1 }
   0x5   :  { %p417_p2 = pnand %p415_p1, %p412_p0 }
   0x7   :  { %420 = shalt.err (!%p417_p2)
}
   0x8   :  { %s421_s21 = scalar_lea.vmem %s18_s13, 1024  ;;  %p426_p4 = scmp.lt.s32.totalorder %s18_s13, %s18_s13 }
   0x9   :  { %p422_p3 = scmp.ne.s32.totalorder %s18_s13, %s421_s21  ;;  %p427_p5 = scmp.lt.s32.totalorder %s421_s21, %s421_s21 }
   0xb   :  { %p428_p6 = por %p427_p5, %p426_p4 }
   0xd   :  { %p429_p7 = pnand %p428_p6, %p422_p3 }
   0xf   :  { %432 = shalt.err (!%p429_p7)
}
  0x10   :  { %s460_s22 = smov 64   ;;  %s461_s23 = smov 4  }
  0x11   :  { %23 = dma.hbm_to_vmem [thread:$0]  %s537_s1, 1024, %s18_s13, [#allocation3], %s460_s22, %s460_s22, %s461_s23  }
  0x12   :  { %455 = dma.done.wait [#allocation3], 1024  }
  0x13   :  { %456 = vsyncadd [#allocation3], 4294966272  ;;  %v462_v0 = vmov 0.0|0.0   ;;  %v463_v1 = vmov 0.0   ;;  %vm464_vm0 = vmmov 0   ;;  %v465_v2 = vmov 0  }
  0x14   :  { %359 = vmatprep.subr.bf16.mxu1 %v462_v0  ;;  %304 = vmatprep.subr.bf16.mxu0 %v463_v1  ;;  %v30_v3 = vld [vmem:[#allocation2] sm:$0xff]   ;;  %v32_v4 = vld [vmem:[#allocation2 + $0x8] sm:$0xff]   ;;  %v34_v15 = vld [vmem:[#allocation2 + $0x10] sm:$0xff]   ;;  %v466_v53 = vmov 1.0   ;;  %v246_v61 = vlaneseq  ;;  %s467_s28 = smov [#allocation5]  }
  0x15   :  { %356 = vmatprep.mubr.msk.f32.mxu1 %vm464_vm0, %v463_v1  ;;  %320 = vmatprep.mubr.msk.bf16.mxu0 %vm464_vm0, %v463_v1  ;;  %v135_v5 = vunpack.c.l.bf16 %v30_v3  ;;  %v136_v6 = vunpack.c.h.bf16 %v30_v3  ;;  %v137_v9 = vunpack.c.l.bf16 %v32_v4  ;;  %v138_v10 = vunpack.c.h.bf16 %v32_v4  ;;  %v239_v11 = vld [vmem:[%s538_s2] sm:$0xff]  ;;  %v36_v21 = vld [vmem:[#allocation2 + $0x18] sm:$0xff]   ;;  %v40_v33 = vld [vmem:[#allocation2 + $0x28] sm:$0xff]  }
  0x16   :  { %392 = vset.pattern.permute.xlu0 %v465_v2  ;;  %305 = vmatpush3.bf16.xpose.msra.mxu0 %v30_v3  ;;  %v139_v17 = vunpack.c.l.bf16 %v34_v15  ;;  %v140_v18 = vunpack.c.h.bf16 %v34_v15  ;;  %v141_v23 = vunpack.c.l.bf16 %v36_v21  ;;  %v142_v24 = vunpack.c.h.bf16 %v36_v21  ;;  %v38_v27 = vld [vmem:[#allocation2 + $0x20] sm:$0xff]   ;;  %v42_v39 = vld [vmem:[#allocation2 + $0x30] sm:$0xff]   ;;  %v44_v45 = vld [vmem:[#allocation2 + $0x38] sm:$0xff]  }
  0x17   :  { %v151_v7 = vmul.f32 %v135_v5, %v135_v5  ;;  %v152_v8 = vmul.f32 %v136_v6, %v136_v6  ;;  %242 = vperm.xlu0 %392, %v239_v11   ;;  %306 = vmatprep.subr.bf16.mxu0 %v463_v1  ;;  %v153_v13 = vmul.f32 %v137_v9, %v137_v9  ;;  %v143_v29 = vunpack.c.l.bf16 %v38_v27  ;;  %v46_v52 = vld [vmem:[%s536_s0] sm:$0xf]  ;;  %s260_s0 = sshll.u32 %s467_s28, 4  ;;  %s261_s0 = int_to_ptr.vmem [resolvable:$true] %s260_s0 }
  0x18   :  { %v154_v14 = vmul.f32 %v138_v10, %v138_v10  ;;  %v155_v19 = vmul.f32 %v139_v17, %v139_v17  ;;  %v156_v20 = vmul.f32 %v140_v18, %v140_v18  ;;  %v157_v25 = vmul.f32 %v141_v23, %v141_v23  ;;  %s433_s29 = scalar_lea.vmem %s261_s0, 128  ;;  %p438_p9 = scmp.lt.s32.totalorder %s261_s0, %s261_s0 }
  0x19   :  { %v360_v12 = vpack.c.bf16 %v152_v8, %v151_v7  ;;  %v158_v26 = vmul.f32 %v142_v24, %v142_v24  ;;  %v144_v30 = vunpack.c.h.bf16 %v38_v27  ;;  %v159_v31 = vmul.f32 %v143_v29, %v143_v29  ;;  %p434_p8 = scmp.ne.s32.totalorder %s261_s0, %s433_s29  ;;  %p439_p10 = scmp.lt.s32.totalorder %s433_s29, %s433_s29 }
  0x1a   :  { %v363_v16 = vpack.c.bf16 %v154_v14, %v153_v13  ;;  %v366_v22 = vpack.c.bf16 %v156_v20, %v155_v19  ;;  %v145_v35 = vunpack.c.l.bf16 %v40_v33  ;;  %v146_v36 = vunpack.c.h.bf16 %v40_v33 }
  0x1b   :  { %361 = vmatpush3.bf16.xpose.msra.mxu1 %v360_v12  ;;  %v369_v28 = vpack.c.bf16 %v158_v26, %v157_v25  ;;  %v160_v32 = vmul.f32 %v144_v30, %v144_v30  ;;  %v147_v41 = vunpack.c.l.bf16 %v42_v39  ;;  %v148_v42 = vunpack.c.h.bf16 %v42_v39  ;;  %p440_p11 = por %p439_p10, %p438_p9 }
  0x1c   :  { %362 = vmatprep.subr.bf16.mxu1 %v462_v0  ;;  %v161_v37 = vmul.f32 %v145_v35, %v145_v35  ;;  %v162_v38 = vmul.f32 %v146_v36, %v146_v36  ;;  %v149_v47 = vunpack.c.l.bf16 %v44_v45  ;;  %v150_v48 = vunpack.c.h.bf16 %v44_v45 }
  0x1d   :  { %v372_v34 = vpack.c.bf16 %v160_v32, %v159_v31  ;;  %v163_v43 = vmul.f32 %v147_v41, %v147_v41  ;;  %v164_v44 = vmul.f32 %v148_v42, %v148_v42  ;;  %v247_v62 = vshrl.u32 %v246_v61, 7  ;;  %p441_p12 = pnand %p440_p11, %p434_p8 }
  0x1e   :  { %307 = vmatpush3.bf16.xpose.msra.mxu0 %v32_v4  ;;  %v375_v40 = vpack.c.bf16 %v162_v38, %v161_v37  ;;  %v165_v49 = vmul.f32 %v149_v47, %v149_v47  ;;  %v166_v50 = vmul.f32 %v150_v48, %v150_v48 }
  0x1f   :  { %308 = vmatprep.subr.bf16.mxu0 %v463_v1  ;;  %v378_v46 = vpack.c.bf16 %v164_v44, %v163_v43 }
  0x20   :  { %v381_v51 = vpack.c.bf16 %v166_v50, %v165_v49 }
  0x23   :  { %364 = vmatpush3.bf16.xpose.msra.mxu1 %v363_v16 }
  0x24   :  { %365 = vmatprep.subr.bf16.mxu1 %v462_v0 }
  0x26   :  { %309 = vmatpush3.bf16.xpose.msra.mxu0 %v34_v15 }
  0x27   :  { %310 = vmatprep.subr.bf16.mxu0 %v463_v1 }
  0x2b   :  { %367 = vmatpush3.bf16.xpose.msra.mxu1 %v366_v22 }
  0x2c   :  { %368 = vmatprep.subr.bf16.mxu1 %v462_v0 }
  0x2e   :  { %311 = vmatpush3.bf16.xpose.msra.mxu0 %v36_v21 }
  0x2f   :  { %312 = vmatprep.subr.bf16.mxu0 %v463_v1 }
  0x33   :  { %370 = vmatpush3.bf16.xpose.msra.mxu1 %v369_v28 }
  0x34   :  { %371 = vmatprep.subr.bf16.mxu1 %v462_v0 }
  0x36   :  { %313 = vmatpush3.bf16.xpose.msra.mxu0 %v38_v27 }
  0x37   :  { %314 = vmatprep.subr.bf16.mxu0 %v463_v1 }
  0x3b   :  { %373 = vmatpush3.bf16.xpose.msra.mxu1 %v372_v34 }
  0x3c   :  { %374 = vmatprep.subr.bf16.mxu1 %v462_v0 }
  0x3e   :  { %315 = vmatpush3.bf16.xpose.msra.mxu0 %v40_v33 }
  0x3f   :  { %316 = vmatprep.subr.bf16.mxu0 %v463_v1 }
  0x43   :  { %376 = vmatpush3.bf16.xpose.msra.mxu1 %v375_v40 }
  0x44   :  { %377 = vmatprep.subr.bf16.mxu1 %v462_v0 }
  0x46   :  { %317 = vmatpush3.bf16.xpose.msra.mxu0 %v42_v39 }
  0x47   :  { %318 = vmatprep.subr.bf16.mxu0 %v463_v1 }
  0x4b   :  { %379 = vmatpush3.bf16.xpose.msra.mxu1 %v378_v46 }
  0x4c   :  { %380 = vmatprep.subr.bf16.mxu1 %v462_v0  ;;  %v248_v0 = vsub.s32 0, %v247_v62 }
  0x4e   :  { %319 = vmatpush3.bf16.xpose.msra.mxu0 %v44_v45 }
  0x53   :  { %382 = vmatpush3.bf16.xpose.msra.mxu1 %v381_v51 }
  0x55   :  { %321 = vmatmul.mubr.bf16.vlgmr.msra.gmra.mrb[0].mxu0 %v46_v52 }
  0x5a   :  { %357 = vmatmul.mubr.f32.vlgmr.msra.gmra.mrb[0].mxu1 %v466_v53 }
  0x96   :  { %v243_v63 = vpop.permute.xlu0 %242 }
 0x128   :  { %v129_v54 = vpop.f32.mrb[0].mxu0 }
 0x129   :  { %v322_v55 = vpop.f32.mrb[1].mxu0  ;;  %v245_v1 = vmul.f32 %v243_v63, %v129_v54 }
 0x12a   :  { %v132_v56 = vpop.f32.mrb[2].mxu0 }
 0x12b   :  { %v323_v58 = vpop.f32.mrb[3].mxu0 }
 0x12d   :  { %v233_v57 = vpop.f32.mrb[0].mxu1 }
 0x12e   :  { %v237_v59 = vmax.f32 %v233_v57, 1e-08  ;;  %v358_v60 = vpop.f32.mrb[1].mxu1 }
 0x130   :  { %409 = vrsqrt.f32 %v237_v59 }
 0x13a   :  { %v410_v2 = vpop.eup %409 }
 0x13b   :  { %v249_v3 = vrot.slane %v410_v2, %v248_v0 }
 0x13d   :  { %v250_v4 = vmul.f32 %v249_v3, %v245_v1 }
 0x13f   :  { %v277_v5 = vclamps-f32 %v250_v4, 30.0 }
 0x141   :  { %253 = vst [vmem:[#allocation5] sm:$0xff] %v277_v5 }
 0x142   :  { %444 = shalt.err (!%p441_p12)
}
 0x143   :  { %s445_s5 = scalar_lea.hbm %s539_s3, 128 }
 0x144   :  { %p446_p13 = scmp.ne.s32.totalorder %s539_s3, %s445_s5  ;;  %p449_p0 = scmp.lt.u32.totalorder %s445_s5, %s539_s3 }
 0x146   :  { %p451_p1 = pnand %p449_p0, %p446_p13 }
 0x148   :  { %454 = shalt.err (!%p451_p1)
}
 0x149   :  { %263 = dma.vmem_to_hbm [thread:$0]  %s261_s0, 128, %s539_s3, [#allocation4]  }
 0x14a   :  { %457 = dma.done.wait [#allocation4], 128  }
 0x14b   :  { %458 = vsyncadd [#allocation4], 4294967168 }
 0x14c   :  { %267 = vsyncpa [#allocation3], 1 }
 0x14d   :  { %268 = vsyncpa [#allocation4], 1 }

</bundles_post_ra>
